<compile_context>
chip_gen: v7x
topology: tpu7x:2x2x1
jax: 0.10.0
libtpu: 0.0.40
codegen_flags: <defaults>
</compile_context>

<pallas_src>
import jax
import jax.numpy as jnp
from jax.experimental import pallas as pl
from jax.experimental.pallas import tpu as pltpu

HIDDEN = 128


def _round_up(x, m):
    return ((x + m - 1) // m) * m


def _cond_regressor_kernel(x_ref, gamma_ref,
                           w1_ref, b1_ref,
                           w2_ref, b2_ref,
                           w3_ref, b3_ref,
                           w4_ref, b4_ref,
                           o_ref):
    H = w1_ref.shape[1]
    x = x_ref[...]            # (TB, D)   f32
    gamma = gamma_ref[...]    # (TB, 3*H) f32 (exact wrapper-side gather)

    def cond_layer(h, w_ref, b_ref, g):
        # bf16 operands into the MXU, f32 accumulation; gate/softplus in f32
        # (softplus hits the EUP, which has its own bundle slot).
        out = jnp.dot(h.astype(jnp.bfloat16), w_ref[...],
                      preferred_element_type=jnp.float32)
        out = g * (out + b_ref[...])
        return jax.nn.softplus(out)

    h = cond_layer(x, w1_ref, b1_ref, gamma[:, 0 * H:1 * H])
    h = cond_layer(h, w2_ref, b2_ref, gamma[:, 1 * H:2 * H])
    h = cond_layer(h, w3_ref, b3_ref, gamma[:, 2 * H:3 * H])

    # Final Linear(H -> 1): VPU multiply + lane reduce (skip a 1-wide MXU pass).
    out = jnp.sum(h * w4_ref[...], axis=-1, keepdims=True) + b4_ref[0, 0]
    o_ref[...] = out.astype(o_ref.dtype)


def conditional_regressor_forward(x, y_t, y_0_hat, t, params, *,
                                  cat_x=True, cat_y_pred=True, batch_tile=512):
    """Concat inputs, gather embedding gammas (plain XLA), run the Pallas kernel."""
    if cat_x:
        eps = (jnp.concatenate((y_t, y_0_hat, x), axis=1) if cat_y_pred
               else jnp.concatenate((y_t, x), axis=1))
    elif cat_y_pred:
        eps = jnp.concatenate((y_t, y_0_hat), axis=1)
    else:
        eps = y_t
    eps = eps.astype(jnp.float32)

    (w1, b1, e1, w2, b2, e2, w3, b3, e3, w4, b4) = params
    B, D = eps.shape
    H = w1.shape[1]

    # Exact embedding gather on a single fused (n_steps, 3*H) table.
    t_idx = t.astype(jnp.int32).reshape(B)
    e_all = jnp.concatenate((e1, e2, e3), axis=1).astype(jnp.float32)
    gamma = jnp.take(e_all, t_idx, axis=0)                     # (B, 3*H) f32

    # Batch tiling: TB multiple of 8 sublanes; default 512, clamped down for
    # small batches. Pad the batch to a multiple of TB (padded rows sliced off).
    TB = max(8, min(_round_up(batch_tile, 8), _round_up(B, 8)))
    Bp = _round_up(B, TB)
    if Bp != B:
        eps = jnp.pad(eps, ((0, Bp - B), (0, 0)))
        gamma = jnp.pad(gamma, ((0, Bp - B), (0, 0)))

    # bf16 MXU operands (halves weight DMA / VMEM residency); biases stay f32.
    w1b = w1.astype(jnp.bfloat16)
    w2b = w2.astype(jnp.bfloat16)
    w3b = w3.astype(jnp.bfloat16)
    w4_row = w4.reshape(1, H).astype(jnp.float32)
    b4s = b4.reshape(1, 1).astype(jnp.float32)

    grid = (Bp // TB,)
    const = lambda i: (0, 0)

    flops = 2 * Bp * (D * H + 2 * H * H + H) + 7 * Bp * 3 * H
    transcendentals = 3 * Bp * H
    bytes_accessed = ((Bp * D + Bp * 3 * H + Bp) * 4
                      + (w1b.size + w2b.size + w3b.size) * 2
                      + (b1.size + b2.size + b3.size + H + 1) * 4)

    out = pl.pallas_call(
        _cond_regressor_kernel,
        grid=grid,
        in_specs=[
            pl.BlockSpec((TB, D), lambda i: (i, 0)),          # eps_pred tile
            pl.BlockSpec((TB, 3 * H), lambda i: (i, 0)),      # gamma tile
            pl.BlockSpec((D, H), const),                      # w1 (resident)
            pl.BlockSpec((1, H), const),                      # b1
            pl.BlockSpec((H, H), const),                      # w2
            pl.BlockSpec((1, H), const),                      # b2
            pl.BlockSpec((H, H), const),                      # w3
            pl.BlockSpec((1, H), const),                      # b3
            pl.BlockSpec((1, H), const),                      # w4 row
            pl.BlockSpec(memory_space=pltpu.MemorySpace.SMEM),  # b4 scalar
        ],
        out_specs=pl.BlockSpec((TB, 1), lambda i: (i, 0)),
        out_shape=jax.ShapeDtypeStruct((Bp, 1), jnp.float32),
        compiler_params=pltpu.CompilerParams(
            dimension_semantics=("parallel",)),
        cost_estimate=pl.CostEstimate(
            flops=int(flops),
            transcendentals=int(transcendentals),
            bytes_accessed=int(bytes_accessed)),
    )(eps, gamma, w1b, b1, w2b, b2, w3b, b3, w4_row, b4s)

    return out[:B]


def init_params(key, data_dim, n_steps, hidden=HIDDEN):
    """Deterministic synthetic parameters (shapes match the PyTorch module)."""
    ks = jax.random.split(key, 11)

    def lin(kw, kb, fan_in, fan_out):
        bound = 1.0 / jnp.sqrt(fan_in)
        w = jax.random.uniform(kw, (fan_in, fan_out), jnp.float32, -bound, bound)
        b = jax.random.uniform(kb, (1, fan_out), jnp.float32, -bound, bound)
        return w, b

    w1, b1 = lin(ks[0], ks[1], data_dim, hidden)
    e1 = jax.random.uniform(ks[2], (n_steps, hidden), jnp.float32)   # uniform_() in [0,1)
    w2, b2 = lin(ks[3], ks[4], hidden, hidden)
    e2 = jax.random.uniform(ks[5], (n_steps, hidden), jnp.float32)
    w3, b3 = lin(ks[6], ks[7], hidden, hidden)
    e3 = jax.random.uniform(ks[8], (n_steps, hidden), jnp.float32)
    w4, b4 = lin(ks[9], ks[10], hidden, 1)
    return (w1, b1, e1, w2, b2, e2, w3, b3, e3, w4, b4)


def reference_forward(x, y_t, y_0_hat, t, params, *, cat_x=True, cat_y_pred=True):
    """Pure-JAX f32 reference matching the PyTorch module."""
    if cat_x:
        eps = (jnp.concatenate((y_t, y_0_hat, x), axis=1) if cat_y_pred
               else jnp.concatenate((y_t, x), axis=1))
    elif cat_y_pred:
        eps = jnp.concatenate((y_t, y_0_hat), axis=1)
    else:
        eps = y_t
    (w1, b1, e1, w2, b2, e2, w3, b3, e3, w4, b4) = params

    def cl(h, w, b, e):
        return e[t] * (h @ w + b)

    h = jax.nn.softplus(cl(eps, w1, b1, e1))
    h = jax.nn.softplus(cl(h, w2, b2, e2))
    h = jax.nn.softplus(cl(h, w3, b3, e3))
    return h @ w4 + b4


if __name__ == "__main__":
    key = jax.random.PRNGKey(0)
    k_x, k_yt, k_y0, k_t, k_p = jax.random.split(key, 5)

    # Small shapes consistent with the module.
    batch, x_dim, y_dim, n_steps = 8, 5, 1, 100
    cat_x, cat_y_pred = True, True
    data_dim = y_dim + (x_dim if cat_x else 0) + (y_dim if cat_y_pred else 0)

    x = jax.random.normal(k_x, (batch, x_dim), jnp.float32)
    y_t = jax.random.normal(k_yt, (batch, y_dim), jnp.float32)
    y_0_hat = jax.random.normal(k_y0, (batch, y_dim), jnp.float32)
    t = jax.random.randint(k_t, (batch,), 0, n_steps, jnp.int32)

    params = init_params(k_p, data_dim, n_steps)

    out = conditional_regressor_forward(x, y_t, y_0_hat, t, params,
                                        cat_x=cat_x, cat_y_pred=cat_y_pred)
    out = jax.block_until_ready(out)
    ref = reference_forward(x, y_t, y_0_hat, t, params,
                            cat_x=cat_x, cat_y_pred=cat_y_pred)
    assert out.shape == (batch, 1)
    # bf16 MXU operands vs. f32 reference -> loose-ish tolerance.
    assert jnp.allclose(out, ref, atol=2e-2, rtol=2e-2), (out, ref)

    # Second config: batch not a multiple of the tile + multi-step grid,
    # exercising the padding path and the batch pipeline.
    batch2 = 50
    k2 = jax.random.PRNGKey(1)
    k_x2, k_yt2, k_y02, k_t2 = jax.random.split(k2, 4)
    x2 = jax.random.normal(k_x2, (batch2, x_dim), jnp.float32)
    y_t2 = jax.random.normal(k_yt2, (batch2, y_dim), jnp.float32)
    y_0_hat2 = jax.random.normal(k_y02, (batch2, y_dim), jnp.float32)
    t2 = jax.random.randint(k_t2, (batch2,), 0, n_steps, jnp.int32)

    out2 = conditional_regressor_forward(x2, y_t2, y_0_hat2, t2, params,
                                         cat_x=cat_x, cat_y_pred=cat_y_pred,
                                         batch_tile=16)
    out2 = jax.block_until_ready(out2)
    ref2 = reference_forward(x2, y_t2, y_0_hat2, t2, params,
                             cat_x=cat_x, cat_y_pred=cat_y_pred)
    assert out2.shape == (batch2, 1)
    assert jnp.allclose(out2, ref2, atol=2e-2, rtol=2e-2), (out2, ref2)

    print("KERNEL_OK")
</pallas_src>

<mosaic_0001>
module attributes {stable_mosaic.version = 11 : i64} {
  func.func @_cond_regressor_kernel(%arg0: i32, %arg1: memref<8x7xf32, #tpu.memory_space<vmem>>, %arg2: memref<8x384xf32, #tpu.memory_space<vmem>>, %arg3: memref<7x128xbf16, #tpu.memory_space<vmem>>, %arg4: memref<1x128xf32, #tpu.memory_space<vmem>>, %arg5: memref<128x128xbf16, #tpu.memory_space<vmem>>, %arg6: memref<1x128xf32, #tpu.memory_space<vmem>>, %arg7: memref<128x128xbf16, #tpu.memory_space<vmem>>, %arg8: memref<1x128xf32, #tpu.memory_space<vmem>>, %arg9: memref<1x128xf32, #tpu.memory_space<vmem>>, %arg10: memref<1x1xf32, #tpu.memory_space<smem>>, %arg11: memref<8x1xf32, #tpu.memory_space<vmem>>) attributes {dimension_semantics = [#tpu.dimension_semantics<parallel>], iteration_bounds = array<i64: 1>, scalar_prefetch = 0 : i64, scratch_operands = 0 : i64, tpu.core_type = #tpu.core_type<tc>, window_params = [{transform_indices = @transform_0, window_bounds = array<i64: 8, 7>}, {transform_indices = @transform_1, window_bounds = array<i64: 8, 384>}, {pipeline_mode = #tpu.pipeline_mode<synchronous>, transform_indices = @transform_2, window_bounds = array<i64: 7, 128>}, {pipeline_mode = #tpu.pipeline_mode<synchronous>, transform_indices = @transform_3, window_bounds = array<i64: 1, 128>}, {pipeline_mode = #tpu.pipeline_mode<synchronous>, transform_indices = @transform_4, window_bounds = array<i64: 128, 128>}, {pipeline_mode = #tpu.pipeline_mode<synchronous>, transform_indices = @transform_5, window_bounds = array<i64: 1, 128>}, {pipeline_mode = #tpu.pipeline_mode<synchronous>, transform_indices = @transform_6, window_bounds = array<i64: 128, 128>}, {pipeline_mode = #tpu.pipeline_mode<synchronous>, transform_indices = @transform_7, window_bounds = array<i64: 1, 128>}, {pipeline_mode = #tpu.pipeline_mode<synchronous>, transform_indices = @transform_8, window_bounds = array<i64: 1, 128>}, {transform_indices = @transform_9, window_bounds = array<i64: 1, 1>}, {transform_indices = @transform_10, window_bounds = array<i64: 8, 1>}]} {
    %c0 = arith.constant 0 : index
    %c0_0 = arith.constant 0 : index
    %0 = vector.load %arg1[%c0, %c0_0] : memref<8x7xf32, #tpu.memory_space<vmem>>, vector<8x7xf32>
    %c0_1 = arith.constant 0 : index
    %c0_2 = arith.constant 0 : index
    %1 = vector.load %arg2[%c0_1, %c0_2] : memref<8x384xf32, #tpu.memory_space<vmem>>, vector<8x384xf32>
    %2 = vector.extract_strided_slice %1 {offsets = [0, 0], sizes = [8, 128], strides = [1, 1]} : vector<8x384xf32> to vector<8x128xf32>
    %3 = arith.truncf %0 : vector<8x7xf32> to vector<8x7xbf16>
    %c0_3 = arith.constant 0 : index
    %c0_4 = arith.constant 0 : index
    %4 = vector.load %arg3[%c0_3, %c0_4] : memref<7x128xbf16, #tpu.memory_space<vmem>>, vector<7x128xbf16>
    %cst = arith.constant dense<0.000000e+00> : vector<8x128xf32>
    %5 = tpu.matmul %3, %4, %cst {dimension_numbers = #tpu.dot_dimension_numbers<[1], [0], [0], [1], [0, 0, 1, 1], [], []>} : vector<8x7xbf16>, vector<7x128xbf16>, vector<8x128xf32> -> vector<8x128xf32>
    %c0_5 = arith.constant 0 : index
    %c0_6 = arith.constant 0 : index
    %6 = vector.load %arg4[%c0_5, %c0_6] : memref<1x128xf32, #tpu.memory_space<vmem>>, vector<1x128xf32>
    %7 = vector.broadcast %6 : vector<1x128xf32> to vector<8x128xf32>
    %8 = arith.addf %5, %7 : vector<8x128xf32>
    %9 = arith.mulf %2, %8 : vector<8x128xf32>
    %cst_7 = arith.constant 0.000000e+00 : f32
    %10 = vector.broadcast %cst_7 : f32 to vector<8x128xf32>
    %11 = arith.maximumf %9, %10 : vector<8x128xf32>
    %12 = vector.broadcast %cst_7 : f32 to vector<8x128xf32>
    %13 = arith.subf %9, %12 : vector<8x128xf32>
    %14 = arith.cmpf one, %13, %13 : vector<8x128xf32>
    %15 = vector.broadcast %cst_7 : f32 to vector<8x128xf32>
    %16 = arith.addf %9, %15 : vector<8x128xf32>
    %17 = math.absf %13 : vector<8x128xf32>
    %cst_8 = arith.constant 0.000000e+00 : f32
    %18 = vector.broadcast %cst_8 : f32 to vector<8x128xf32>
    %19 = arith.subf %18, %17 : vector<8x128xf32>
    %20 = math.exp %19 : vector<8x128xf32>
    %21 = math.log1p %20 : vector<8x128xf32>
    %22 = arith.addf %11, %21 : vector<8x128xf32>
    %23 = arith.select %14, %16, %22 : vector<8x128xi1>, vector<8x128xf32>
    %24 = vector.extract_strided_slice %1 {offsets = [0, 128], sizes = [8, 128], strides = [1, 1]} : vector<8x384xf32> to vector<8x128xf32>
    %25 = arith.truncf %23 : vector<8x128xf32> to vector<8x128xbf16>
    %c0_9 = arith.constant 0 : index
    %c0_10 = arith.constant 0 : index
    %26 = vector.load %arg5[%c0_9, %c0_10] : memref<128x128xbf16, #tpu.memory_space<vmem>>, vector<128x128xbf16>
    %cst_11 = arith.constant dense<0.000000e+00> : vector<8x128xf32>
    %27 = tpu.matmul %25, %26, %cst_11 {dimension_numbers = #tpu.dot_dimension_numbers<[1], [0], [0], [1], [0, 0, 1, 1], [], []>} : vector<8x128xbf16>, vector<128x128xbf16>, vector<8x128xf32> -> vector<8x128xf32>
    %c0_12 = arith.constant 0 : index
    %c0_13 = arith.constant 0 : index
    %28 = vector.load %arg6[%c0_12, %c0_13] : memref<1x128xf32, #tpu.memory_space<vmem>>, vector<1x128xf32>
    %29 = vector.broadcast %28 : vector<1x128xf32> to vector<8x128xf32>
    %30 = arith.addf %27, %29 : vector<8x128xf32>
    %31 = arith.mulf %24, %30 : vector<8x128xf32>
    %cst_14 = arith.constant 0.000000e+00 : f32
    %32 = vector.broadcast %cst_14 : f32 to vector<8x128xf32>
    %33 = arith.maximumf %31, %32 : vector<8x128xf32>
    %34 = vector.broadcast %cst_14 : f32 to vector<8x128xf32>
    %35 = arith.subf %31, %34 : vector<8x128xf32>
    %36 = arith.cmpf one, %35, %35 : vector<8x128xf32>
    %37 = vector.broadcast %cst_14 : f32 to vector<8x128xf32>
    %38 = arith.addf %31, %37 : vector<8x128xf32>
    %39 = math.absf %35 : vector<8x128xf32>
    %cst_15 = arith.constant 0.000000e+00 : f32
    %40 = vector.broadcast %cst_15 : f32 to vector<8x128xf32>
    %41 = arith.subf %40, %39 : vector<8x128xf32>
    %42 = math.exp %41 : vector<8x128xf32>
    %43 = math.log1p %42 : vector<8x128xf32>
    %44 = arith.addf %33, %43 : vector<8x128xf32>
    %45 = arith.select %36, %38, %44 : vector<8x128xi1>, vector<8x128xf32>
    %46 = vector.extract_strided_slice %1 {offsets = [0, 256], sizes = [8, 128], strides = [1, 1]} : vector<8x384xf32> to vector<8x128xf32>
    %47 = arith.truncf %45 : vector<8x128xf32> to vector<8x128xbf16>
    %c0_16 = arith.constant 0 : index
    %c0_17 = arith.constant 0 : index
    %48 = vector.load %arg7[%c0_16, %c0_17] : memref<128x128xbf16, #tpu.memory_space<vmem>>, vector<128x128xbf16>
    %cst_18 = arith.constant dense<0.000000e+00> : vector<8x128xf32>
    %49 = tpu.matmul %47, %48, %cst_18 {dimension_numbers = #tpu.dot_dimension_numbers<[1], [0], [0], [1], [0, 0, 1, 1], [], []>} : vector<8x128xbf16>, vector<128x128xbf16>, vector<8x128xf32> -> vector<8x128xf32>
    %c0_19 = arith.constant 0 : index
    %c0_20 = arith.constant 0 : index
    %50 = vector.load %arg8[%c0_19, %c0_20] : memref<1x128xf32, #tpu.memory_space<vmem>>, vector<1x128xf32>
    %51 = vector.broadcast %50 : vector<1x128xf32> to vector<8x128xf32>
    %52 = arith.addf %49, %51 : vector<8x128xf32>
    %53 = arith.mulf %46, %52 : vector<8x128xf32>
    %cst_21 = arith.constant 0.000000e+00 : f32
    %54 = vector.broadcast %cst_21 : f32 to vector<8x128xf32>
    %55 = arith.maximumf %53, %54 : vector<8x128xf32>
    %56 = vector.broadcast %cst_21 : f32 to vector<8x128xf32>
    %57 = arith.subf %53, %56 : vector<8x128xf32>
    %58 = arith.cmpf one, %57, %57 : vector<8x128xf32>
    %59 = vector.broadcast %cst_21 : f32 to vector<8x128xf32>
    %60 = arith.addf %53, %59 : vector<8x128xf32>
    %61 = math.absf %57 : vector<8x128xf32>
    %cst_22 = arith.constant 0.000000e+00 : f32
    %62 = vector.broadcast %cst_22 : f32 to vector<8x128xf32>
    %63 = arith.subf %62, %61 : vector<8x128xf32>
    %64 = math.exp %63 : vector<8x128xf32>
    %65 = math.log1p %64 : vector<8x128xf32>
    %66 = arith.addf %55, %65 : vector<8x128xf32>
    %67 = arith.select %58, %60, %66 : vector<8x128xi1>, vector<8x128xf32>
    %c0_23 = arith.constant 0 : index
    %c0_24 = arith.constant 0 : index
    %68 = vector.load %arg9[%c0_23, %c0_24] : memref<1x128xf32, #tpu.memory_space<vmem>>, vector<1x128xf32>
    %69 = vector.broadcast %68 : vector<1x128xf32> to vector<8x128xf32>
    %70 = arith.mulf %67, %69 : vector<8x128xf32>
    %cst_25 = arith.constant dense<0.000000e+00> : vector<8xf32>
    %71 = vector.multi_reduction <add>, %70, %cst_25 [1] : vector<8x128xf32> to vector<8xf32>
    %72 = vector.shape_cast %71 : vector<8xf32> to vector<8x1xf32>
    %c0_26 = arith.constant 0 : index
    %c0_27 = arith.constant 0 : index
    %73 = memref.load %arg10[%c0_26, %c0_27] : memref<1x1xf32, #tpu.memory_space<smem>>
    %74 = vector.broadcast %73 : f32 to vector<8x1xf32>
    %75 = arith.addf %72, %74 : vector<8x1xf32>
    %c0_28 = arith.constant 0 : index
    %c0_29 = arith.constant 0 : index
    %76 = vector.load %arg11[%c0_28, %c0_29] : memref<8x1xf32, #tpu.memory_space<vmem>>, vector<8x1xf32>
    tpu.vector_store %arg11[%c0_28, %c0_29], %75 {strides = array<i32>} : memref<8x1xf32, #tpu.memory_space<vmem>>, vector<8x1xf32>,
    return
  }
  func.func @transform_0(%arg0: i32) -> (i32, i32) {
    %c0_i32 = arith.constant 0 : i32
    %c0_i32_0 = arith.constant 0 : i32
    return %arg0, %c0_i32 : i32, i32
  }
  func.func @transform_1(%arg0: i32) -> (i32, i32) {
    %c0_i32 = arith.constant 0 : i32
    %c0_i32_0 = arith.constant 0 : i32
    return %arg0, %c0_i32 : i32, i32
  }
  func.func @transform_2(%arg0: i32) -> (i32, i32) {
    %c0_i32 = arith.constant 0 : i32
    %c0_i32_0 = arith.constant 0 : i32
    %c0_i32_1 = arith.constant 0 : i32
    return %c0_i32, %c0_i32_0 : i32, i32
  }
  func.func @transform_3(%arg0: i32) -> (i32, i32) {
    %c0_i32 = arith.constant 0 : i32
    %c0_i32_0 = arith.constant 0 : i32
    %c0_i32_1 = arith.constant 0 : i32
    return %c0_i32, %c0_i32_0 : i32, i32
  }
  func.func @transform_4(%arg0: i32) -> (i32, i32) {
    %c0_i32 = arith.constant 0 : i32
    %c0_i32_0 = arith.constant 0 : i32
    %c0_i32_1 = arith.constant 0 : i32
    return %c0_i32, %c0_i32_0 : i32, i32
  }
  func.func @transform_5(%arg0: i32) -> (i32, i32) {
    %c0_i32 = arith.constant 0 : i32
    %c0_i32_0 = arith.constant 0 : i32
    %c0_i32_1 = arith.constant 0 : i32
    return %c0_i32, %c0_i32_0 : i32, i32
  }
  func.func @transform_6(%arg0: i32) -> (i32, i32) {
    %c0_i32 = arith.constant 0 : i32
    %c0_i32_0 = arith.constant 0 : i32
    %c0_i32_1 = arith.constant 0 : i32
    return %c0_i32, %c0_i32_0 : i32, i32
  }
  func.func @transform_7(%arg0: i32) -> (i32, i32) {
    %c0_i32 = arith.constant 0 : i32
    %c0_i32_0 = arith.constant 0 : i32
    %c0_i32_1 = arith.constant 0 : i32
    return %c0_i32, %c0_i32_0 : i32, i32
  }
  func.func @transform_8(%arg0: i32) -> (i32, i32) {
    %c0_i32 = arith.constant 0 : i32
    %c0_i32_0 = arith.constant 0 : i32
    %c0_i32_1 = arith.constant 0 : i32
    return %c0_i32, %c0_i32_0 : i32, i32
  }
  func.func @transform_9(%arg0: i32) -> (i32, i32) {
    %c0_i32 = arith.constant 0 : i32
    %c0_i32_0 = arith.constant 0 : i32
    %c0_i32_1 = arith.constant 0 : i32
    return %c0_i32, %c0_i32_0 : i32, i32
  }
  func.func @transform_10(%arg0: i32) -> (i32, i32) {
    %c0_i32 = arith.constant 0 : i32
    %c0_i32_0 = arith.constant 0 : i32
    return %arg0, %c0_i32 : i32, i32
  }
}

</mosaic_0001>

<bundles_post_ra>
// kernel: tpu_custom_call.1
= control target key start
LH: loop header
LB: loop body
LE: loop exit
PB: predicated region body
PF: predicated region fallthrough
CT: control target
= control target key end

     0   :  { %16 = vsyncpa [#allocation4], 0  ;;  %s826_s0 = inlined_call_operand.hbm [shape: f32[8,7], index: 0, kind: input, shape index: {}]   ;;  %s827_s1 = inlined_call_operand.hbm [shape: f32[8,384], index: 1, kind: input, shape index: {}]   ;;  %s828_s2 = inlined_call_operand.vmem [shape: bf16[7,128], index: 2, kind: input, shape index: {}]   ;;  %s829_s3 = inlined_call_operand.vmem [shape: f32[1,128], index: 3, kind: input, shape index: {}]   ;;  %s830_s4 = inlined_call_operand.hbm [shape: bf16[128,128], index: 4, kind: input, shape index: {}]   ;;  %s831_s5 = inlined_call_operand.vmem [shape: f32[1,128], index: 5, kind: input, shape index: {}]   ;;  %s832_s6 = inlined_call_operand.hbm [shape: bf16[128,128], index: 6, kind: input, shape index: {}]   ;;  %s833_s7 = inlined_call_operand.vmem [shape: f32[1,128], index: 7, kind: input, shape index: {}]   ;;  %s834_s8 = inlined_call_operand.vmem [shape: f32[1,128], index: 8, kind: input, shape index: {}]   ;;  %s835_s9 = inlined_call_operand.<no memory space> [shape: f32[1,1], index: 9, kind: input, shape index: {}]   ;;  %s836_s10 = inlined_call_operand.vmem [shape: f32[8,1], index: 10, kind: output, shape index: {}]  }
   0x1   :  { %17 = vsyncpa [#allocation6], 0 }
   0x2   :  { %18 = vsyncpa [#allocation9], 0  ;;  %s673_s13 = smov [#allocation5]   ;;  %s674_s15 = smov [#allocation3]  }
   0x3   :  { %s35_s14 = sshll.u32 %s673_s13, 4  ;;  %s25_s16 = sshll.u32 %s674_s15, 4  ;;  %s36_s14 = int_to_ptr.vmem [resolvable:$true] %s35_s14  ;;  %s26_s16 = int_to_ptr.vmem [resolvable:$true] %s25_s16 }
   0x4   :  { %s579_s19 = scalar_lea.hbm %s827_s1, 384 }
   0x5   :  { %p580_p0 = scmp.ne.s32.totalorder %s827_s1, %s579_s19  ;;  %p583_p1 = scmp.lt.u32.totalorder %s579_s19, %s827_s1 }
   0x7   :  { %p585_p2 = pnand %p583_p1, %p580_p0 }
   0x9   :  { %588 = shalt.err (!%p585_p2)
}
   0xa   :  { %s589_s24 = scalar_lea.vmem %s36_s14, 384  ;;  %p594_p4 = scmp.lt.s32.totalorder %s36_s14, %s36_s14 }
   0xb   :  { %p590_p3 = scmp.ne.s32.totalorder %s36_s14, %s589_s24  ;;  %p595_p5 = scmp.lt.s32.totalorder %s589_s24, %s589_s24 }
   0xd   :  { %p596_p6 = por %p595_p5, %p594_p4 }
   0xf   :  { %p597_p7 = pnand %p596_p6, %p590_p3 }
  0x11   :  { %600 = shalt.err (!%p597_p7)
}
  0x12   :  { %38 = dma.hbm_to_vmem [thread:$0]  %s827_s1, 384, %s36_s14, [#allocation6]  }
  0x13   :  { %s601_s29 = scalar_lea.hbm %s826_s0, 128 }
  0x14   :  { %p602_p8 = scmp.ne.s32.totalorder %s826_s0, %s601_s29  ;;  %p605_p9 = scmp.lt.u32.totalorder %s601_s29, %s826_s0 }
  0x16   :  { %p607_p10 = pnand %p605_p9, %p602_p8 }
  0x18   :  { %610 = shalt.err (!%p607_p10)
}
  0x19   :  { %s611_s15 = scalar_lea.vmem %s26_s16, 128  ;;  %p616_p12 = scmp.lt.s32.totalorder %s26_s16, %s26_s16 }
  0x1a   :  { %p612_p11 = scmp.ne.s32.totalorder %s26_s16, %s611_s15  ;;  %p617_p13 = scmp.lt.s32.totalorder %s611_s15, %s611_s15 }
  0x1c   :  { %p618_p0 = por %p617_p13, %p616_p12 }
  0x1e   :  { %p619_p1 = pnand %p618_p0, %p612_p11 }
  0x20   :  { %622 = shalt.err (!%p619_p1)
}
  0x21   :  { %28 = dma.hbm_to_vmem [thread:$0]  %s826_s0, 128, %s26_s16, [#allocation4]  }
  0x22   :  { %s675_s17 = smov [#allocation7]   ;;  %s623_s21 = scalar_lea.hbm %s830_s4, 1024 }
  0x23   :  { %s48_s18 = sshll.u32 %s675_s17, 4  ;;  %p624_p2 = scmp.ne.s32.totalorder %s830_s4, %s623_s21  ;;  %s49_s18 = int_to_ptr.vmem [resolvable:$true] %s48_s18 }
  0x24   :  { %p627_p3 = scmp.lt.u32.totalorder %s623_s21, %s830_s4 }
  0x26   :  { %p629_p4 = pnand %p627_p3, %p624_p2 }
  0x28   :  { %632 = shalt.err (!%p629_p4)
}
  0x29   :  { %s633_s26 = scalar_lea.vmem %s49_s18, 1024  ;;  %p638_p6 = scmp.lt.s32.totalorder %s49_s18, %s49_s18 }
  0x2a   :  { %p634_p5 = scmp.ne.s32.totalorder %s49_s18, %s633_s26  ;;  %p639_p7 = scmp.lt.s32.totalorder %s633_s26, %s633_s26 }
  0x2c   :  { %p640_p8 = por %p639_p7, %p638_p6 }
  0x2e   :  { %p641_p9 = pnand %p640_p8, %p634_p5 }
  0x30   :  { %644 = shalt.err (!%p641_p9)
}
  0x31   :  { %s676_s0 = smov 64   ;;  %s677_s16 = smov 4  }
  0x32   :  { %54 = dma.hbm_to_vmem [thread:$0]  %s830_s4, 1024, %s49_s18, [#allocation6], %s676_s0, %s676_s0, %s677_s16  }
  0x33   :  { %s678_s29 = smov [#allocation8]   ;;  %s645_s13 = scalar_lea.hbm %s832_s6, 1024 }
  0x34   :  { %s62_s30 = sshll.u32 %s678_s29, 4  ;;  %p646_p10 = scmp.ne.s32.totalorder %s832_s6, %s645_s13  ;;  %s63_s30 = int_to_ptr.vmem [resolvable:$true] %s62_s30 }
  0x35   :  { %p649_p11 = scmp.lt.u32.totalorder %s645_s13, %s832_s6 }
  0x37   :  { %p651_p12 = pnand %p649_p11, %p646_p10 }
  0x39   :  { %654 = shalt.err (!%p651_p12)
}
  0x3a   :  { %s655_s19 = scalar_lea.vmem %s63_s30, 1024  ;;  %p660_p0 = scmp.lt.s32.totalorder %s63_s30, %s63_s30 }
  0x3b   :  { %p656_p13 = scmp.ne.s32.totalorder %s63_s30, %s655_s19  ;;  %p661_p1 = scmp.lt.s32.totalorder %s655_s19, %s655_s19 }
  0x3d   :  { %p662_p2 = por %p661_p1, %p660_p0 }
  0x3f   :  { %p663_p3 = pnand %p662_p2, %p656_p13 }
  0x41   :  { %666 = shalt.err (!%p663_p3)
}
  0x42   :  { %68 = dma.hbm_to_vmem [thread:$0]  %s832_s6, 1024, %s63_s30, [#allocation9], %s676_s0, %s676_s0, %s677_s16  }
  0x43   :  { %667 = dma.done.wait [#allocation4], 128  }
  0x44   :  { %668 = vsyncadd [#allocation4], 4294967168 }
  0x45   :  { %669 = dma.done.wait [#allocation6], 1408  }
  0x46   :  { %670 = vsyncadd [#allocation6], 4294965888 }
  0x47   :  { %671 = dma.done.wait [#allocation9], 1024  }
  0x48   :  { %672 = vsyncadd [#allocation9], 4294966272  ;;  %vm105_vm0 = vcmask 1042432   ;;  %v679_v0 = vmov 0.0   ;;  %vm106_vm1 = vcmask 1043456   ;;  %v680_v1 = vmov 65535  }
  0x49   :  { %496 = vmatprep.subr.bf16.mxu0 %v679_v0  ;;  %502 = vmatprep.subr.bf16.mxu1 %v679_v0  ;;  %v107_v2 = vsel %vm105_vm0, 4294967295, %v680_v1  ;;  %vm681_vm2 = vmmov 0   ;;  %v93_v4 = vld [vmem:[%s828_s2] sm:$0xf]  ;;  %vm101_vm3 = vcmask 56320   ;;  %v552_v9 = vld [vmem:[#allocation7 + $0x8] sm:$0xff]  }
  0x4a   :  { %498 = vmatprep.mubr.msk.bf16.mxu0 %vm681_vm2, %v679_v0  ;;  %518 = vmatprep.mubr.msk.bf16.mxu1 %vm681_vm2, %v679_v0  ;;  %v108_v3 = vsel %vm106_vm1, %v107_v2, 0  ;;  %v88_v5 = vld [vmem:[#allocation3] sm:$0xff]  ;;  %v553_v10 = vld [vmem:[#allocation7 + $0x10] sm:$0xff]   ;;  %v554_v11 = vld [vmem:[#allocation7 + $0x18] sm:$0xff]   ;;  %vm446_vm10 = vcmask 7168  }
  0x4b   :  { %v110_v6 = vand.u32 %v108_v3, %v93_v4  ;;  %v92_v7 = vpack.c.bf16 %v88_v5, %v88_v5  ;;  %v551_v8 = vld [vmem:[#allocation7] sm:$0xff]   ;;  %v556_v13 = vld [vmem:[#allocation7 + $0x28] sm:$0xff]   ;;  %v557_v14 = vld [vmem:[#allocation7 + $0x30] sm:$0xff]  }
  0x4c   :  { %503 = vmatpush3.bf16.msra.mxu1 %v551_v8  ;;  %v555_v12 = vld [vmem:[#allocation7 + $0x20] sm:$0xff]   ;;  %v558_v15 = vld [vmem:[#allocation7 + $0x38] sm:$0xff]   ;;  %v89_v17 = vld [vmem:[#allocation5] sm:$0xff] }
  0x4d   :  { %497 = vmatpush3.bf16.msra.mxu0 %v110_v6  ;;  %504 = vmatprep.subr.bf16.mxu1 %v679_v0  ;;  %v455_v16 = vld [vmem:[%s829_s3] ss:$0 sm:$0xff]  ;;  %v560_v41 = vld [vmem:[#allocation8 + $0x8] sm:$0xff]   ;;  %v561_v42 = vld [vmem:[#allocation8 + $0x10] sm:$0xff]  }
  0x4e   :  { %522 = vmatprep.subr.bf16.mxu0 %v679_v0  ;;  %v559_v40 = vld [vmem:[#allocation8] sm:$0xff]   ;;  %v562_v43 = vld [vmem:[#allocation8 + $0x18] sm:$0xff]   ;;  %v564_v45 = vld [vmem:[#allocation8 + $0x28] sm:$0xff]  }
  0x4f   :  { %v563_v44 = vld [vmem:[#allocation8 + $0x20] sm:$0xff]   ;;  %v565_v46 = vld [vmem:[#allocation8 + $0x30] sm:$0xff]   ;;  %v566_v47 = vld [vmem:[#allocation8 + $0x38] sm:$0xff]  }
  0x50   :  { %499 = vmatmul.mubr.msk.bf16.vlgmr.msra.gmra.mrb[0].mxu0 %vm101_vm3, %v92_v7  ;;  %505 = vmatpush3.bf16.msra.mxu1 %v552_v9  ;;  %v457_v48 = vld [vmem:[%s831_s5] ss:$0 sm:$0xff]  ;;  %v90_v49 = vld [vmem:[#allocation5 + $0x8] sm:$0xff]  ;;  %v91_v9 = vld [vmem:[#allocation5 + $0x10] sm:$0xff] }
  0x51   :  { %538 = vmatprep.mubr.msk.bf16.mxu0 %vm681_vm2, %v679_v0  ;;  %506 = vmatprep.subr.bf16.mxu1 %v679_v0  ;;  %v466_v8 = vld [vmem:[%s833_s7] ss:$0 sm:$0xff] }
  0x52   :  { %523 = vmatpush3.bf16.msra.mxu0 %v559_v40 }
  0x53   :  { %524 = vmatprep.subr.bf16.mxu0 %v679_v0 }
  0x54   :  { %507 = vmatpush3.bf16.msra.mxu1 %v553_v10 }
  0x55   :  { %508 = vmatprep.subr.bf16.mxu1 %v679_v0 }
  0x56   :  { %525 = vmatpush3.bf16.msra.mxu0 %v560_v41 }
  0x57   :  { %526 = vmatprep.subr.bf16.mxu0 %v679_v0 }
  0x58   :  { %509 = vmatpush3.bf16.msra.mxu1 %v554_v11 }
  0x59   :  { %510 = vmatprep.subr.bf16.mxu1 %v679_v0 }
  0x5a   :  { %527 = vmatpush3.bf16.msra.mxu0 %v561_v42 }
  0x5b   :  { %528 = vmatprep.subr.bf16.mxu0 %v679_v0 }
  0x5c   :  { %511 = vmatpush3.bf16.msra.mxu1 %v555_v12 }
  0x5d   :  { %512 = vmatprep.subr.bf16.mxu1 %v679_v0 }
  0x5e   :  { %529 = vmatpush3.bf16.msra.mxu0 %v562_v43 }
  0x5f   :  { %530 = vmatprep.subr.bf16.mxu0 %v679_v0 }
  0x60   :  { %513 = vmatpush3.bf16.msra.mxu1 %v556_v13 }
  0x61   :  { %514 = vmatprep.subr.bf16.mxu1 %v679_v0 }
  0x62   :  { %531 = vmatpush3.bf16.msra.mxu0 %v563_v44 }
  0x63   :  { %532 = vmatprep.subr.bf16.mxu0 %v679_v0 }
  0x64   :  { %515 = vmatpush3.bf16.msra.mxu1 %v557_v14 }
  0x65   :  { %516 = vmatprep.subr.bf16.mxu1 %v679_v0 }
  0x66   :  { %533 = vmatpush3.bf16.msra.mxu0 %v564_v45 }
  0x67   :  { %534 = vmatprep.subr.bf16.mxu0 %v679_v0 }
  0x68   :  { %517 = vmatpush3.bf16.msra.mxu1 %v558_v15 }
  0x6a   :  { %535 = vmatpush3.bf16.msra.mxu0 %v565_v46 }
  0x6b   :  { %536 = vmatprep.subr.bf16.mxu0 %v679_v0 }
  0x6e   :  { %537 = vmatpush3.bf16.msra.mxu0 %v566_v47 }
 0x123   :  { %v146_v18 = vpop.f32.mrb[0].mxu0 }
 0x124   :  { %v147_v19 = vadd.f32 %v455_v16, %v146_v18  ;;  %v500_v20 = vpop.f32.mrb[1].mxu0 }
 0x125   :  { %v149_v21 = vpop.f32.mrb[2].mxu0 }
 0x126   :  { %v152_v22 = vmul.f32 %v147_v19, %v89_v17  ;;  %v501_v23 = vpop.f32.mrb[3].mxu0 }
 0x128   :  { %v156_v24 = vand.u32 2147483647, %v152_v22  ;;  %v153_v35 = vmax.f32 %v152_v22, 0.0  ;;  %vm154_vm5 = vcmp.ne.f32.partialorder %v152_v22, %v152_v22 }
 0x12a   :  { %v157_v25 = vsub.f32 0.0, %v156_v24 }
 0x12c   :  { %v158_v26 = vmul.f32 1.442695, %v157_v25 }
 0x12e   :  { %567 = vpow2.f32 %v158_v26 }
 0x138   :  { %v568_v27 = vpop.eup %567 }
 0x139   :  { %v160_v28 = vadd.f32 1.0, %v568_v27  ;;  %v163_v29 = vmul.f32 -0.5, %v568_v27  ;;  %v166_v31 = vand.u32 2147483647, %v568_v27 }
 0x13b   :  { %569 = vlog2.f32 %v160_v28  ;;  %v164_v30 = vadd.f32 1.0, %v163_v29  ;;  %vm167_vm4 = vcmp.lt.f32.partialorder %v166_v31, 0.0004427343 }
 0x13d   :  { %v165_v34 = vmul.f32 %v568_v27, %v164_v30  ;;  %v475_v30 = vld [vmem:[%s834_s8] ss:$0 sm:$0xff] }
 0x145   :  { %v570_v32 = vpop.eup %569 }
 0x146   :  { %v162_v33 = vmul.f32 0.6931472, %v570_v32 }
 0x148   :  { %v168_v36 = vsel %vm167_vm4, %v165_v34, %v162_v33  ;;  %v444_v33 = vstv %s835_s9 }
 0x149   :  { %v169_v37 = vadd.f32 %v168_v36, %v153_v35 }
 0x14b   :  { %v170_v38 = vsel %vm154_vm5, %v152_v22, %v169_v37 }
 0x14c   :  { %v171_v39 = vpack.c.bf16 %v170_v38, %v170_v38 }
 0x14e   :  { %519 = vmatmul.mubr.bf16.vlgmr.msra.gmra.mrb[0].mxu1 %v171_v39 }
 0x221   :  { %v277_v50 = vpop.f32.mrb[0].mxu1 }
 0x222   :  { %v278_v51 = vadd.f32 %v457_v48, %v277_v50  ;;  %v520_v52 = vpop.f32.mrb[1].mxu1 }
 0x223   :  { %v280_v53 = vpop.f32.mrb[2].mxu1 }
 0x224   :  { %v283_v54 = vmul.f32 %v278_v51, %v90_v49  ;;  %v521_v55 = vpop.f32.mrb[3].mxu1 }
 0x226   :  { %v287_v56 = vand.u32 2147483647, %v283_v54  ;;  %v284_v3 = vmax.f32 %v283_v54, 0.0  ;;  %vm285_vm7 = vcmp.ne.f32.partialorder %v283_v54, %v283_v54 }
 0x228   :  { %v288_v57 = vsub.f32 0.0, %v287_v56 }
 0x22a   :  { %v289_v58 = vmul.f32 1.442695, %v288_v57 }
 0x22c   :  { %571 = vpow2.f32 %v289_v58 }
 0x236   :  { %v572_v59 = vpop.eup %571 }
 0x237   :  { %v291_v60 = vadd.f32 1.0, %v572_v59  ;;  %v294_v61 = vmul.f32 -0.5, %v572_v59  ;;  %v297_v63 = vand.u32 2147483647, %v572_v59 }
 0x239   :  { %573 = vlog2.f32 %v291_v60  ;;  %v295_v62 = vadd.f32 1.0, %v294_v61  ;;  %vm298_vm6 = vcmp.lt.f32.partialorder %v297_v63, 0.0004427343 }
 0x23b   :  { %v296_v2 = vmul.f32 %v572_v59, %v295_v62 }
 0x243   :  { %v574_v0 = vpop.eup %573 }
 0x244   :  { %v293_v1 = vmul.f32 0.6931472, %v574_v0 }
 0x246   :  { %v299_v4 = vsel %vm298_vm6, %v296_v2, %v293_v1 }
 0x247   :  { %v300_v5 = vadd.f32 %v299_v4, %v284_v3 }
 0x249   :  { %v301_v6 = vsel %vm285_vm7, %v283_v54, %v300_v5 }
 0x24a   :  { %v302_v7 = vpack.c.bf16 %v301_v6, %v301_v6 }
 0x24c   :  { %539 = vmatmul.mubr.bf16.vlgmr.msra.gmra.mrb[4].mxu0 %v302_v7 }
 0x31f   :  { %v408_v10 = vpop.f32.mrb[4].mxu0 }
 0x320   :  { %v409_v11 = vadd.f32 %v466_v8, %v408_v10  ;;  %v540_v12 = vpop.f32.mrb[5].mxu0 }
 0x321   :  { %v411_v13 = vpop.f32.mrb[6].mxu0 }
 0x322   :  { %v414_v14 = vmul.f32 %v409_v11, %v91_v9  ;;  %v541_v15 = vpop.f32.mrb[7].mxu0 }
 0x324   :  { %v418_v16 = vand.u32 2147483647, %v414_v14  ;;  %v415_v27 = vmax.f32 %v414_v14, 0.0  ;;  %vm416_vm9 = vcmp.ne.f32.partialorder %v414_v14, %v414_v14 }
 0x326   :  { %v419_v17 = vsub.f32 0.0, %v418_v16 }
 0x328   :  { %v420_v18 = vmul.f32 1.442695, %v419_v17 }
 0x32a   :  { %575 = vpow2.f32 %v420_v18 }
 0x334   :  { %v576_v19 = vpop.eup %575 }
 0x335   :  { %v422_v20 = vadd.f32 1.0, %v576_v19  ;;  %v425_v21 = vmul.f32 -0.5, %v576_v19  ;;  %v428_v23 = vand.u32 2147483647, %v576_v19 }
 0x337   :  { %577 = vlog2.f32 %v422_v20  ;;  %v426_v22 = vadd.f32 1.0, %v425_v21  ;;  %vm429_vm8 = vcmp.lt.f32.partialorder %v428_v23, 0.0004427343 }
 0x339   :  { %v427_v26 = vmul.f32 %v576_v19, %v426_v22 }
 0x341   :  { %v578_v24 = vpop.eup %577 }
 0x342   :  { %v424_v25 = vmul.f32 0.6931472, %v578_v24 }
 0x344   :  { %v430_v28 = vsel %vm429_vm8, %v427_v26, %v424_v25 }
 0x345   :  { %v431_v29 = vadd.f32 %v430_v28, %v415_v27 }
 0x347   :  { %v432_v31 = vsel %vm416_vm9, %v414_v14, %v431_v29 }
 0x348   :  { %v440_v32 = vmul.f32 %v475_v30, %v432_v31 }
 0x34a   :  { %441 = vadd.xlane.f32.xlu0 %v440_v32 }
 0x3d7   :  { %v442_v34 = vpop.xlane.xlu0 %441 }
 0x3d8   :  { %v445_v35 = vadd.f32 %v444_v33, %v442_v34 }
 0x3da   :  { %447 = vst.msk [vmem:[%s836_s10] sm:$0xff] %vm446_vm10, %v445_v35 }
 0x3db   :  { %452 = vsyncpa [#allocation4], 1 }
 0x3dc   :  { %453 = vsyncpa [#allocation6], 1 }
 0x3dd   :  { %454 = vsyncpa [#allocation9], 1 }

</bundles_post_ra>
